<compile_context>
chip_gen: v6e
topology: v6e:2x2x1
jax: 0.10.0
libtpu: 0.0.40
codegen_flags: <defaults>
</compile_context>

<pallas_src>
import math

import jax
import jax.numpy as jnp
from jax.experimental import pallas as pl
from jax.experimental.pallas import tpu as pltpu

EPS = 1e-6  # matches module __init__ eps = 10**(-6)

_VMEM_TILE_BUDGET = 8 * 1024 * 1024    # per-step in+out double-buffered tile budget
_VMEM_LIMIT_BYTES = 32 * 1024 * 1024   # scoped VMEM limit; safe on all gens incl. v7x (64 MiB/TC)
_TARGET_GRID_STEPS = 16                # only enforced on multi-TensorCore chips (v7x)
_MAX_FOLD = 16                         # max rows folded into the lane dim for small H


def _ceil_div(a, b):
    return -(-a // b)


def _round_up(a, b):
    return _ceil_div(a, b) * b


def _device_kind():
    try:
        return jax.devices()[0].device_kind.lower()
    except Exception:
        return ""


def _num_tensorcores(kind):
    # v7x has 2 TensorCores per chip sharing the grid; v5e/v6e have 1.
    return 2 if "7" in kind else 1


def _fold_factor(rows, h):
    """Rows folded into the lane dim so block last-dim is a multiple of 128 (lane-dense)."""
    if h >= 128:
        return 1
    k = 128 // math.gcd(h, 128)  # smallest k with (k*h) % 128 == 0
    if 1 < k <= _MAX_FOLD and rows % k == 0:
        return k
    return 1


def _pick_row_tile(rows, h_eff, dtype, num_cores):
    """Largest sublane-dense row tile within the VMEM budget; grid kept long only on 2-TC chips."""
    itemsize = jnp.dtype(dtype).itemsize
    # Dense sublane packing: 8 rows for 32-bit, 16 for bf16, 32 for int8/fp8.
    sublane = max(8, 32 // max(itemsize, 1))
    # Per tile row: input + output double-buffered, plus ~3 f32 temporaries of headroom
    # (covers the f32 upcast / diff / diff^2 working set).
    bytes_per_row = h_eff * (2 * 2 * itemsize + 3 * 4)
    tile = max(sublane, (_VMEM_TILE_BUDGET // bytes_per_row) // sublane * sublane)
    if num_cores > 1 and rows >= _TARGET_GRID_STEPS * sublane:
        # Keep the grid long enough that the second TensorCore (v7x megacore) has work.
        step_cap = _round_up(_ceil_div(rows, _TARGET_GRID_STEPS), sublane)
        tile = min(tile, max(step_cap, sublane))
    if tile >= rows:
        return int(rows)  # single full-extent block: always layout-legal
    return int(tile)      # multiple of sublane; ragged last block handled by cdiv grid


def _make_kernel(k, h, bf16_elemwise):
    """LayerNorm over each length-h segment of the (row_tile, k*h) lane-dense block."""
    inv_h = 1.0 / h
    inv_hm1 = 1.0 / (h - 1)  # ddof=1 (torch.std unbiased)

    def kernel(alpha_ref, bias_ref, x_ref, o_ref):
        xw = x_ref[...].astype(jnp.float32)   # (R, k*h) lane-dense load; f32 stats
        alpha = alpha_ref[0]
        bias = bias_ref[0]
        segs = []
        for j in range(k):                    # static unroll; k is small (<= _MAX_FOLD)
            xs = xw[:, j * h:(j + 1) * h]     # one original row per segment
            mean = jnp.sum(xs, axis=-1, keepdims=True) * inv_h
            diff = xs - mean
            var = jnp.sum(diff * diff, axis=-1, keepdims=True) * inv_hm1
            std = jnp.sqrt(var)
            # eps added to std (torch semantics); exact reciprocal holds 1e-5 tolerance;
            # fold alpha in so the per-element work is one multiply + one add.
            inv = pl.reciprocal(std + EPS, approx=False)
            scale = alpha * inv
            if bf16_elemwise:
                seg_out = (diff.astype(jnp.bfloat16) * scale.astype(jnp.bfloat16)
                           + bias.astype(jnp.bfloat16))
            else:
                seg_out = diff * scale + bias
            segs.append(seg_out)
        out = segs[0] if k == 1 else jnp.concatenate(segs, axis=-1)
        o_ref[...] = out.astype(o_ref.dtype)  # (R, k*h) lane-dense store
    return kernel


@jax.jit
def layer_normalization(x, alpha, bias):
    orig_shape = x.shape
    h = orig_shape[-1]
    assert h >= 2, "unbiased std (ddof=1) needs hidden dim >= 2"

    rows = 1
    for d in orig_shape[:-1]:
        rows *= d

    kind = _device_kind()
    num_cores = _num_tensorcores(kind)

    # Lane-density fold for small H (pure reshape of contiguous memory, no copy).
    k = _fold_factor(rows, h)
    rows_eff = rows // k
    h_eff = k * h
    x2d = x.reshape(rows_eff, h_eff)

    # TODO(synk): no H-blocked fallback yet — for huge H (f32 H >~ 500K) even a
    # sublane-height tile exceeds the VMEM limit and compilation would fail.
    row_tile = _pick_row_tile(rows_eff, h_eff, x.dtype, num_cores)
    grid = (pl.cdiv(rows_eff, row_tile),)  # no padding; ragged last block is masked

    # v5e's VPU has no bf16: keep the elementwise epilogue in f32 there.
    bf16_elemwise = (x.dtype == jnp.bfloat16) and ("v5" not in kind)

    kernel = _make_kernel(k, h, bf16_elemwise)

    alpha_s = jnp.asarray(alpha, jnp.float32).reshape((1,))
    bias_s = jnp.asarray(bias, jnp.float32).reshape((1,))

    out = pl.pallas_call(
        kernel,
        out_shape=jax.ShapeDtypeStruct((rows_eff, h_eff), x.dtype),
        grid_spec=pltpu.PrefetchScalarGridSpec(
            num_scalar_prefetch=0,
            grid=grid,
            in_specs=[
                pl.BlockSpec(memory_space=pltpu.MemorySpace.SMEM),   # alpha (1,)
                pl.BlockSpec(memory_space=pltpu.MemorySpace.SMEM),   # bias  (1,)
                pl.BlockSpec((row_tile, h_eff), lambda i: (i, 0)),   # x row tile
            ],
            out_specs=pl.BlockSpec((row_tile, h_eff), lambda i: (i, 0)),
        ),
        compiler_params=pltpu.CompilerParams(
            dimension_semantics=("parallel",),
            vmem_limit_bytes=_VMEM_LIMIT_BYTES,
        ),
    )(alpha_s, bias_s, x2d)

    return out.reshape(orig_shape)


if __name__ == "__main__":
    key = jax.random.PRNGKey(0)
    batch, seq, hidden = 2, 8, 32
    x = jax.random.normal(key, (batch, seq, hidden), dtype=jnp.float32)

    # Deterministic parameter init per nn.Parameter(torch.ones(1)) / torch.zeros(1)
    alpha = jnp.ones((1,), dtype=jnp.float32)
    bias = jnp.zeros((1,), dtype=jnp.float32)

    y = layer_normalization(x, alpha, bias)
    jax.block_until_ready(y)

    # Reference check (pure JAX, same semantics as the PyTorch module).
    mean = jnp.mean(x, axis=-1, keepdims=True)
    std = jnp.std(x, axis=-1, keepdims=True, ddof=1)
    y_ref = alpha[0] * (x - mean) / (std + EPS) + bias[0]
    assert jnp.allclose(y, y_ref, atol=1e-5, rtol=1e-5), "mismatch vs reference"

    print("KERNEL_OK")
</pallas_src>

<mosaic_0001>
module attributes {stable_mosaic.version = 11 : i64} {
  func.func @kernel(%arg0: i32, %arg1: memref<1xf32, #tpu.memory_space<smem>>, %arg2: memref<1xf32, #tpu.memory_space<smem>>, %arg3: memref<4x128xf32, #tpu.memory_space<vmem>>, %arg4: memref<4x128xf32, #tpu.memory_space<vmem>>) attributes {dimension_semantics = [#tpu.dimension_semantics<parallel>], iteration_bounds = array<i64: 1>, scalar_prefetch = 0 : i64, scratch_operands = 0 : i64, tpu.core_type = #tpu.core_type<tc>, window_params = [{transform_indices = @transform_0, window_bounds = array<i64: 1>}, {transform_indices = @transform_1, window_bounds = array<i64: 1>}, {transform_indices = @transform_2, window_bounds = array<i64: 4, 128>}, {transform_indices = @transform_3, window_bounds = array<i64: 4, 128>}]} {
    %c0 = arith.constant 0 : index
    %c0_0 = arith.constant 0 : index
    %0 = vector.load %arg3[%c0, %c0_0] : memref<4x128xf32, #tpu.memory_space<vmem>>, vector<4x128xf32>
    %c0_1 = arith.constant 0 : index
    %1 = memref.load %arg1[%c0_1] : memref<1xf32, #tpu.memory_space<smem>>
    %c0_2 = arith.constant 0 : index
    %2 = memref.load %arg2[%c0_2] : memref<1xf32, #tpu.memory_space<smem>>
    %3 = vector.extract_strided_slice %0 {offsets = [0, 0], sizes = [4, 32], strides = [1, 1]} : vector<4x128xf32> to vector<4x32xf32>
    %cst = arith.constant dense<0.000000e+00> : vector<4xf32>
    %4 = vector.multi_reduction <add>, %3, %cst [1] : vector<4x32xf32> to vector<4xf32>
    %5 = vector.shape_cast %4 : vector<4xf32> to vector<4x1xf32>
    %cst_3 = arith.constant 3.125000e-02 : f32
    %6 = vector.broadcast %cst_3 : f32 to vector<4x1xf32>
    %7 = arith.mulf %5, %6 : vector<4x1xf32>
    %8 = vector.broadcast %7 : vector<4x1xf32> to vector<4x32xf32>
    %9 = arith.subf %3, %8 : vector<4x32xf32>
    %10 = arith.mulf %9, %9 : vector<4x32xf32>
    %cst_4 = arith.constant dense<0.000000e+00> : vector<4xf32>
    %11 = vector.multi_reduction <add>, %10, %cst_4 [1] : vector<4x32xf32> to vector<4xf32>
    %12 = vector.shape_cast %11 : vector<4xf32> to vector<4x1xf32>
    %cst_5 = arith.constant 0.0322580636 : f32
    %13 = vector.broadcast %cst_5 : f32 to vector<4x1xf32>
    %14 = arith.mulf %12, %13 : vector<4x1xf32>
    %15 = math.sqrt %14 : vector<4x1xf32>
    %cst_6 = arith.constant 9.99999997E-7 : f32
    %16 = vector.broadcast %cst_6 : f32 to vector<4x1xf32>
    %17 = arith.addf %15, %16 : vector<4x1xf32>
    %18 = tpu.reciprocal %17 : vector<4x1xf32> -> vector<4x1xf32>
    %19 = vector.broadcast %1 : f32 to vector<4x1xf32>
    %20 = arith.mulf %19, %18 : vector<4x1xf32>
    %21 = vector.broadcast %20 : vector<4x1xf32> to vector<4x32xf32>
    %22 = arith.mulf %9, %21 : vector<4x32xf32>
    %23 = vector.broadcast %2 : f32 to vector<4x32xf32>
    %24 = arith.addf %22, %23 : vector<4x32xf32>
    %25 = vector.extract_strided_slice %0 {offsets = [0, 32], sizes = [4, 32], strides = [1, 1]} : vector<4x128xf32> to vector<4x32xf32>
    %cst_7 = arith.constant dense<0.000000e+00> : vector<4xf32>
    %26 = vector.multi_reduction <add>, %25, %cst_7 [1] : vector<4x32xf32> to vector<4xf32>
    %27 = vector.shape_cast %26 : vector<4xf32> to vector<4x1xf32>
    %cst_8 = arith.constant 3.125000e-02 : f32
    %28 = vector.broadcast %cst_8 : f32 to vector<4x1xf32>
    %29 = arith.mulf %27, %28 : vector<4x1xf32>
    %30 = vector.broadcast %29 : vector<4x1xf32> to vector<4x32xf32>
    %31 = arith.subf %25, %30 : vector<4x32xf32>
    %32 = arith.mulf %31, %31 : vector<4x32xf32>
    %cst_9 = arith.constant dense<0.000000e+00> : vector<4xf32>
    %33 = vector.multi_reduction <add>, %32, %cst_9 [1] : vector<4x32xf32> to vector<4xf32>
    %34 = vector.shape_cast %33 : vector<4xf32> to vector<4x1xf32>
    %cst_10 = arith.constant 0.0322580636 : f32
    %35 = vector.broadcast %cst_10 : f32 to vector<4x1xf32>
    %36 = arith.mulf %34, %35 : vector<4x1xf32>
    %37 = math.sqrt %36 : vector<4x1xf32>
    %cst_11 = arith.constant 9.99999997E-7 : f32
    %38 = vector.broadcast %cst_11 : f32 to vector<4x1xf32>
    %39 = arith.addf %37, %38 : vector<4x1xf32>
    %40 = tpu.reciprocal %39 : vector<4x1xf32> -> vector<4x1xf32>
    %41 = vector.broadcast %1 : f32 to vector<4x1xf32>
    %42 = arith.mulf %41, %40 : vector<4x1xf32>
    %43 = vector.broadcast %42 : vector<4x1xf32> to vector<4x32xf32>
    %44 = arith.mulf %31, %43 : vector<4x32xf32>
    %45 = vector.broadcast %2 : f32 to vector<4x32xf32>
    %46 = arith.addf %44, %45 : vector<4x32xf32>
    %47 = vector.extract_strided_slice %0 {offsets = [0, 64], sizes = [4, 32], strides = [1, 1]} : vector<4x128xf32> to vector<4x32xf32>
    %cst_12 = arith.constant dense<0.000000e+00> : vector<4xf32>
    %48 = vector.multi_reduction <add>, %47, %cst_12 [1] : vector<4x32xf32> to vector<4xf32>
    %49 = vector.shape_cast %48 : vector<4xf32> to vector<4x1xf32>
    %cst_13 = arith.constant 3.125000e-02 : f32
    %50 = vector.broadcast %cst_13 : f32 to vector<4x1xf32>
    %51 = arith.mulf %49, %50 : vector<4x1xf32>
    %52 = vector.broadcast %51 : vector<4x1xf32> to vector<4x32xf32>
    %53 = arith.subf %47, %52 : vector<4x32xf32>
    %54 = arith.mulf %53, %53 : vector<4x32xf32>
    %cst_14 = arith.constant dense<0.000000e+00> : vector<4xf32>
    %55 = vector.multi_reduction <add>, %54, %cst_14 [1] : vector<4x32xf32> to vector<4xf32>
    %56 = vector.shape_cast %55 : vector<4xf32> to vector<4x1xf32>
    %cst_15 = arith.constant 0.0322580636 : f32
    %57 = vector.broadcast %cst_15 : f32 to vector<4x1xf32>
    %58 = arith.mulf %56, %57 : vector<4x1xf32>
    %59 = math.sqrt %58 : vector<4x1xf32>
    %cst_16 = arith.constant 9.99999997E-7 : f32
    %60 = vector.broadcast %cst_16 : f32 to vector<4x1xf32>
    %61 = arith.addf %59, %60 : vector<4x1xf32>
    %62 = tpu.reciprocal %61 : vector<4x1xf32> -> vector<4x1xf32>
    %63 = vector.broadcast %1 : f32 to vector<4x1xf32>
    %64 = arith.mulf %63, %62 : vector<4x1xf32>
    %65 = vector.broadcast %64 : vector<4x1xf32> to vector<4x32xf32>
    %66 = arith.mulf %53, %65 : vector<4x32xf32>
    %67 = vector.broadcast %2 : f32 to vector<4x32xf32>
    %68 = arith.addf %66, %67 : vector<4x32xf32>
    %69 = vector.extract_strided_slice %0 {offsets = [0, 96], sizes = [4, 32], strides = [1, 1]} : vector<4x128xf32> to vector<4x32xf32>
    %cst_17 = arith.constant dense<0.000000e+00> : vector<4xf32>
    %70 = vector.multi_reduction <add>, %69, %cst_17 [1] : vector<4x32xf32> to vector<4xf32>
    %71 = vector.shape_cast %70 : vector<4xf32> to vector<4x1xf32>
    %cst_18 = arith.constant 3.125000e-02 : f32
    %72 = vector.broadcast %cst_18 : f32 to vector<4x1xf32>
    %73 = arith.mulf %71, %72 : vector<4x1xf32>
    %74 = vector.broadcast %73 : vector<4x1xf32> to vector<4x32xf32>
    %75 = arith.subf %69, %74 : vector<4x32xf32>
    %76 = arith.mulf %75, %75 : vector<4x32xf32>
    %cst_19 = arith.constant dense<0.000000e+00> : vector<4xf32>
    %77 = vector.multi_reduction <add>, %76, %cst_19 [1] : vector<4x32xf32> to vector<4xf32>
    %78 = vector.shape_cast %77 : vector<4xf32> to vector<4x1xf32>
    %cst_20 = arith.constant 0.0322580636 : f32
    %79 = vector.broadcast %cst_20 : f32 to vector<4x1xf32>
    %80 = arith.mulf %78, %79 : vector<4x1xf32>
    %81 = math.sqrt %80 : vector<4x1xf32>
    %cst_21 = arith.constant 9.99999997E-7 : f32
    %82 = vector.broadcast %cst_21 : f32 to vector<4x1xf32>
    %83 = arith.addf %81, %82 : vector<4x1xf32>
    %84 = tpu.reciprocal %83 : vector<4x1xf32> -> vector<4x1xf32>
    %85 = vector.broadcast %1 : f32 to vector<4x1xf32>
    %86 = arith.mulf %85, %84 : vector<4x1xf32>
    %87 = vector.broadcast %86 : vector<4x1xf32> to vector<4x32xf32>
    %88 = arith.mulf %75, %87 : vector<4x32xf32>
    %89 = vector.broadcast %2 : f32 to vector<4x32xf32>
    %90 = arith.addf %88, %89 : vector<4x32xf32>
    %91 = tpu.concatenate %24, %46, %68, %90 in 1 : vector<4x32xf32>, vector<4x32xf32>, vector<4x32xf32>, vector<4x32xf32> -> vector<4x128xf32>
    %c0_22 = arith.constant 0 : index
    %c0_23 = arith.constant 0 : index
    %92 = vector.load %arg4[%c0_22, %c0_23] : memref<4x128xf32, #tpu.memory_space<vmem>>, vector<4x128xf32>
    tpu.vector_store %arg4[%c0_22, %c0_23], %91 {strides = array<i32>} : memref<4x128xf32, #tpu.memory_space<vmem>>, vector<4x128xf32>,
    return
  }
  func.func @transform_0(%arg0: i32) -> i32 {
    %c0_i32 = arith.constant 0 : i32
    %c0_i32_0 = arith.constant 0 : i32
    return %c0_i32 : i32
  }
  func.func @transform_1(%arg0: i32) -> i32 {
    %c0_i32 = arith.constant 0 : i32
    %c0_i32_0 = arith.constant 0 : i32
    return %c0_i32 : i32
  }
  func.func @transform_2(%arg0: i32) -> (i32, i32) {
    %c0_i32 = arith.constant 0 : i32
    %c0_i32_0 = arith.constant 0 : i32
    return %arg0, %c0_i32 : i32, i32
  }
  func.func @transform_3(%arg0: i32) -> (i32, i32) {
    %c0_i32 = arith.constant 0 : i32
    %c0_i32_0 = arith.constant 0 : i32
    return %arg0, %c0_i32 : i32, i32
  }
}

</mosaic_0001>

<bundles_post_ra>
// kernel: layer_normalization.1
= control target key start
LH: loop header
LB: loop body
LE: loop exit
PB: predicated region body
PF: predicated region fallthrough
CT: control target
= control target key end

     0   :  { %s162_s14 = smov 96   ;;  %s163_s15 = smov 32   ;;  %vm19_vm0 = vcmask 257024   ;;  %vm132_vm9 = vcmask 261120   ;;  %vm134_vm10 = vcmask 523264   ;;  %vm136_vm11 = vcmask 785408   ;;  %s225_s2 = inlined_call_operand.vmem [shape: f32[4,128], index: 2, kind: input, shape index: {}]   ;;  %s226_s0 = inlined_call_operand.<no memory space> [shape: f32[1], index: 0, kind: input, shape index: {}]   ;;  %s227_s1 = inlined_call_operand.<no memory space> [shape: f32[1], index: 1, kind: input, shape index: {}]   ;;  %s228_s3 = inlined_call_operand.vmem [shape: f32[4,128], index: 3, kind: output, shape index: {}]  }
   0x1   :  { %v16_v0 = vld [vmem:[%s225_s2] sm:$0xf]  ;;  %s164_s16 = smov 64  }
   0x2   :  { %45 = vrot.lane.b32.xlu0 %v16_v0, %s162_s14  ;;  %103 = vrot.lane.b32.xlu1 %v16_v0, %s163_s15  ;;  %v20_v3 = vsel %vm19_vm0, %v16_v0, 0.0 }
   0x6   :  { %74 = vrot.lane.b32.xlu0 %v16_v0, %s164_s16 }
  0x74   :  { %v46_v1 = vpop.permute.xlu0 %45  ;;  %v104_v5 = vpop.permute.xlu1 %103 }
  0x75   :  { %v48_v2 = vsel %vm19_vm0, %v46_v1, 0.0  ;;  %v106_v7 = vsel %vm19_vm0, %v104_v5, 0.0  ;;  %v39_v1 = vstv %s226_s0 }
  0x76   :  { %49 = vadd.xlane.f32.xlu1 %v48_v2 }
  0x78   :  { %v75_v4 = vpop.permute.xlu0 %74 }
  0x79   :  { %v77_v6 = vsel %vm19_vm0, %v75_v4, 0.0 }
  0x7a   :  { %78 = vadd.xlane.f32.xlu0 %v77_v6  ;;  %21 = vadd.xlane.f32.xlu1 %v20_v3 }
  0x7e   :  { %107 = vadd.xlane.f32.xlu0 %v106_v7 }
  0xff   :  { %v50_v8 = vpop.xlane.xlu1 %49 }
 0x100   :  { %v51_v9 = vmul.f32 0.03125, %v50_v8 }
 0x102   :  { %v192_v10 = vsub.f32 %v16_v0, %v51_v9 }
 0x103   :  { %v79_v11 = vpop.xlane.xlu0 %78  ;;  %v22_v20 = vpop.xlane.xlu1 %21 }
 0x104   :  { %v80_v12 = vmul.f32 0.03125, %v79_v11  ;;  %v53_v13 = vmul.f32 %v192_v10, %v192_v10  ;;  %v23_v21 = vmul.f32 0.03125, %v22_v20  ;;  %v42_v11 = vstv %s227_s1 }
 0x106   :  { %v196_v14 = vsub.f32 %v16_v0, %v80_v12  ;;  %55 = vrot.lane.b32.xlu0 %v53_v13, %s162_s14  ;;  %v204_v22 = vsub.f32 %v16_v0, %v23_v21 }
 0x107   :  { %v108_v15 = vpop.xlane.xlu0 %107 }
 0x108   :  { %v109_v16 = vmul.f32 0.03125, %v108_v15  ;;  %v82_v17 = vmul.f32 %v196_v14, %v196_v14  ;;  %v25_v23 = vmul.f32 %v204_v22, %v204_v22 }
 0x10a   :  { %v200_v18 = vsub.f32 %v16_v0, %v109_v16  ;;  %84 = vrot.lane.b32.xlu1 %v82_v17, %s164_s16  ;;  %v26_v24 = vsel %vm19_vm0, %v25_v23, 0.0 }
 0x10c   :  { %v111_v19 = vmul.f32 %v200_v18, %v200_v18 }
 0x10e   :  { %113 = vrot.lane.b32.xlu1 %v111_v19, %s163_s15 }
 0x125   :  { %27 = vadd.xlane.f32.xlu0 %v26_v24 }
 0x178   :  { %v56_v25 = vpop.permute.xlu0 %55 }
 0x179   :  { %v58_v26 = vsel %vm19_vm0, %v56_v25, 0.0 }
 0x17a   :  { %59 = vadd.xlane.f32.xlu1 %v58_v26 }
 0x17c   :  { %v85_v27 = vpop.permute.xlu1 %84 }
 0x17d   :  { %v87_v28 = vsel %vm19_vm0, %v85_v27, 0.0 }
 0x17e   :  { %88 = vadd.xlane.f32.xlu0 %v87_v28 }
 0x180   :  { %v114_v29 = vpop.permute.xlu1 %113 }
 0x181   :  { %v116_v30 = vsel %vm19_vm0, %v114_v29, 0.0 }
 0x182   :  { %117 = vadd.xlane.f32.xlu0 %v116_v30 }
 0x1ae   :  { %v28_v31 = vpop.xlane.xlu0 %27 }
 0x1af   :  { %v29_v32 = vmul.f32 0.032258064, %v28_v31 }
 0x1b1   :  { %146 = vrsqrt.f32 %v29_v32  ;;  %vm32_vm1 = vcmp.eq.f32.partialorder %v29_v32, inf  ;;  %v35_v41 = vand.u32 2147483648, %v29_v32  ;;  %vm34_vm2 = vcmp.eq.f32.partialorder %v29_v32, 0.0 }
 0x1be   :  { %v147_v36 = vpop.eup %146 }
 0x1bf   :  { %v31_v38 = vmul.f32 %v147_v36, %v29_v32 }
 0x1c1   :  { %v33_v42 = vsel %vm32_vm1, %v29_v32, %v31_v38 }
 0x1c2   :  { %v36_v43 = vsel %vm34_vm2, %v35_v41, %v33_v42 }
 0x1c3   :  { %v37_v46 = vadd.f32 1e-06, %v36_v43 }
 0x203   :  { %v60_v33 = vpop.xlane.xlu1 %59 }
 0x204   :  { %v61_v34 = vmul.f32 0.032258064, %v60_v33 }
 0x206   :  { %148 = vrsqrt.f32 %v61_v34  ;;  %vm64_vm3 = vcmp.eq.f32.partialorder %v61_v34, inf  ;;  %v67_v47 = vand.u32 2147483648, %v61_v34  ;;  %vm66_vm4 = vcmp.eq.f32.partialorder %v61_v34, 0.0 }
 0x207   :  { %v89_v35 = vpop.xlane.xlu0 %88 }
 0x208   :  { %v90_v37 = vmul.f32 0.032258064, %v89_v35 }
 0x20a   :  { %150 = vrsqrt.f32 %v90_v37  ;;  %vm93_vm5 = vcmp.eq.f32.partialorder %v90_v37, inf  ;;  %v96_v53 = vand.u32 2147483648, %v90_v37  ;;  %vm95_vm6 = vcmp.eq.f32.partialorder %v90_v37, 0.0 }
 0x20b   :  { %v118_v39 = vpop.xlane.xlu0 %117 }
 0x20c   :  { %v119_v40 = vmul.f32 0.032258064, %v118_v39 }
 0x20e   :  { %152 = vrsqrt.f32 %v119_v40  ;;  %vm122_vm7 = vcmp.eq.f32.partialorder %v119_v40, inf  ;;  %v125_v59 = vand.u32 2147483648, %v119_v40  ;;  %vm124_vm8 = vcmp.eq.f32.partialorder %v119_v40, 0.0 }
 0x20f   :  { %154 = vrcp.f32 %v37_v46 }
 0x213   :  { %v149_v44 = vpop.eup %148 }
 0x214   :  { %v63_v45 = vmul.f32 %v149_v44, %v61_v34 }
 0x216   :  { %v65_v48 = vsel %vm64_vm3, %v61_v34, %v63_v45 }
 0x217   :  { %v151_v49 = vpop.eup %150  ;;  %v68_v50 = vsel %vm66_vm4, %v67_v47, %v65_v48 }
 0x218   :  { %v69_v51 = vadd.f32 1e-06, %v68_v50  ;;  %v92_v52 = vmul.f32 %v151_v49, %v90_v37 }
 0x21a   :  { %156 = vrcp.f32 %v69_v51  ;;  %v94_v54 = vsel %vm93_vm5, %v90_v37, %v92_v52 }
 0x21b   :  { %v153_v55 = vpop.eup %152  ;;  %v97_v56 = vsel %vm95_vm6, %v96_v53, %v94_v54 }
 0x21c   :  { %v98_v57 = vadd.f32 1e-06, %v97_v56  ;;  %v121_v58 = vmul.f32 %v153_v55, %v119_v40  ;;  %v155_v63 = vpop.eup %154 }
 0x21d   :  { %v40_v3 = vmul.f32 %v155_v63, %v39_v1 }
 0x21e   :  { %158 = vrcp.f32 %v98_v57  ;;  %v123_v60 = vsel %vm122_vm7, %v119_v40, %v121_v58 }
 0x21f   :  { %v126_v61 = vsel %vm124_vm8, %v125_v59, %v123_v60  ;;  %v41_v7 = vmul.f32 %v40_v3, %v204_v22 }
 0x220   :  { %v127_v62 = vadd.f32 1e-06, %v126_v61 }
 0x221   :  { %v43_v16 = vadd.f32 %v42_v11, %v41_v7 }
 0x222   :  { %160 = vrcp.f32 %v127_v62 }
 0x227   :  { %v157_v0 = vpop.eup %156 }
 0x228   :  { %v71_v2 = vmul.f32 %v157_v0, %v39_v1 }
 0x22a   :  { %v72_v5 = vmul.f32 %v71_v2, %v192_v10 }
 0x22b   :  { %v159_v4 = vpop.eup %158 }
 0x22c   :  { %v100_v6 = vmul.f32 %v159_v4, %v39_v1  ;;  %v73_v12 = vadd.f32 %v72_v5, %v42_v11 }
 0x22e   :  { %v101_v8 = vmul.f32 %v100_v6, %v196_v14  ;;  %v133_v10 = vsel %vm132_vm9, %v43_v16, %v73_v12 }
 0x22f   :  { %v161_v9 = vpop.eup %160 }
 0x230   :  { %v129_v13 = vmul.f32 %v161_v9, %v39_v1  ;;  %v102_v15 = vadd.f32 %v101_v8, %v42_v11 }
 0x232   :  { %v130_v17 = vmul.f32 %v129_v13, %v200_v18  ;;  %v135_v20 = vsel %vm134_vm10, %v133_v10, %v102_v15 }
 0x234   :  { %v131_v19 = vadd.f32 %v130_v17, %v42_v11 }
 0x236   :  { %v137_v21 = vsel %vm136_vm11, %v135_v20, %v131_v19 }
 0x237   :  { %138 = vst [vmem:[%s228_s3] sm:$0xf] %v137_v21 }

</bundles_post_ra>
